<compile_context>
chip_gen: v5e
topology: v5e:2x2
jax: 0.10.0
libtpu: 0.0.40
codegen_flags: <defaults>
</compile_context>

<pallas_src>
import jax
import jax.numpy as jnp
from jax.experimental import pallas as pl
from jax.experimental.pallas import tpu as pltpu


def _make_sigmoid_kernel(compute_dtype):
    def _sigmoid_kernel(p_ref, o_ref):
        x = p_ref[...].astype(compute_dtype)
        # sigmoid(x) == 0.5 * (tanh(x/2) + 1): a single EUP push (tanh) plus
        # cheap VPU mul/add, vs. exp + divide (>= 2 EUP pushes).
        y = 0.5 * (jnp.tanh(x * 0.5) + 1.0)
        o_ref[...] = y.astype(o_ref.dtype)

    return _sigmoid_kernel


def _tpu_kind():
    """Best-effort device-kind string ('tpu v5 lite', 'tpu v6e', 'tpu v7x', ...)."""
    try:
        return jax.devices()[0].device_kind.lower()
    except Exception:  # non-TPU / query failure: fall back to conservative defaults
        return ""


def _sublane_pack(dtype):
    """Rows per packed sublane tile for this dtype: 8 (32-bit), 16 (16-bit), 32 (8-bit)."""
    size = jnp.dtype(dtype).itemsize
    if size >= 4:
        return 8
    if size == 2:
        return 16
    return 32


def _pick_cols(total):
    """Largest lane-dense width (multiple of 128) dividing `total`, preferring
    widths that leave >= 8 rows (full sublane utilization)."""
    candidates = (2048, 1024, 512, 256, 128)
    for c in candidates:
        if total % c == 0 and total // c >= 8:
            return c
    for c in candidates:
        if total % c == 0:
            return c
    return None


def _pick_block_rows(rows, max_block_rows, pack, min_steps):
    """Row-block size: <= max_block_rows, a multiple of `pack` (or == rows),
    and (when min_steps > 1) small enough to give >= min_steps grid steps."""
    cap = max_block_rows
    if min_steps > 1:
        cap = min(cap, max(pack, rows // min_steps))
    if cap >= rows:
        return rows  # single full block (block dim == array dim -> always legal)
    cap = max(cap, pack)  # never below one packed sublane tile
    # Prefer a pack-aligned divisor of rows (even tiles, no ragged tail).
    aligned = [d for d in range(pack, cap + 1, pack) if rows % d == 0]
    if aligned:
        return max(aligned)
    # Largest pack multiple under the cap; Pallas masks the ragged tail block.
    return (cap // pack) * pack


def learnable_texture_pack_forward(params, *, force_pallas=False,
                                   min_pallas_bytes=64 << 10):
    """params: (T, C, H, W) stacked learnable raster parameters.
    Returns sigmoid(params), i.e. torch.stack([img() for img in pack])."""
    T, C, H, W = params.shape
    dtype = params.dtype
    itemsize = jnp.dtype(dtype).itemsize
    total = T * C * H * W
    total_bytes = total * itemsize

    # Tiny packs: fixed pallas_call + grid prologue overhead exceeds the whole
    # HBM move; the XLA-fused sigmoid is strictly lower latency.
    if total_bytes < min_pallas_bytes and not force_pallas:
        return jax.nn.sigmoid(params)

    kind = _tpu_kind()
    is_v5 = "v5" in kind
    is_v7 = "v7" in kind

    # v5e's VPU/EUP have no bf16 path: force f32 compute there (cast at store).
    if dtype == jnp.bfloat16 and not is_v5:
        compute_dtype = jnp.bfloat16
    else:
        compute_dtype = jnp.float32
    kernel = _make_sigmoid_kernel(compute_dtype)

    # Lane-dense flattening. If the element count isn't a multiple of 128, pad
    # the flat view up so we stay on the tiled, unmasked-store path and slice
    # the pad off the output (never a single whole-4D-array VMEM block).
    cols = _pick_cols(total)
    pad = 0
    if cols is None:
        cols = 1024 if total >= 1024 else 128
        padded_total = pl.cdiv(total, cols) * cols
        pad = padded_total - total
        flat = jnp.pad(params.reshape(-1), (0, pad))
        total_eff = padded_total
    else:
        flat = params.reshape(-1)
        total_eff = total
    rows = total_eff // cols
    x2 = flat.reshape(rows, cols)

    # Block sizing: ~2 MiB blocks (4 MiB on v7x), sublane-pack aligned, and at
    # least `min_steps` grid steps for non-tiny packs so reads/writes overlap
    # and both v7x TensorCores get grid work.  Double-buffered in+out footprint
    # is <= 16 MiB, inside every generation's scoped VMEM with the 32 MiB cap.
    target_block_bytes = (4 << 20) if is_v7 else (2 << 20)
    max_block_rows = max(1, target_block_bytes // (cols * itemsize))
    min_steps = 1
    if total_bytes > (512 << 10):
        min_steps = 8 if is_v7 else 4
    pack = _sublane_pack(dtype)
    block_rows = _pick_block_rows(rows, max_block_rows, pack, min_steps)
    grid = (pl.cdiv(rows, block_rows),)

    out2 = pl.pallas_call(
        kernel,
        out_shape=jax.ShapeDtypeStruct((rows, cols), dtype),
        grid=grid,
        in_specs=[pl.BlockSpec((block_rows, cols), lambda i: (i, 0))],
        out_specs=pl.BlockSpec((block_rows, cols), lambda i: (i, 0)),
        compiler_params=pltpu.CompilerParams(
            dimension_semantics=("parallel",),
            vmem_limit_bytes=32 << 20,
        ),
    )(x2)

    out_flat = out2.reshape(-1)
    if pad:
        out_flat = out_flat[:total]
    return out_flat.reshape(T, C, H, W)


if __name__ == "__main__":
    key = jax.random.PRNGKey(0)

    # 1) Small shapes consistent with the module: num_textures=2, channels=4, 16x16.
    num_textures, num_channels, height, width = 2, 4, 16, 16
    k0, k1, k2 = jax.random.split(key, 3)
    params = jax.random.normal(
        k0, (num_textures, num_channels, height, width), dtype=jnp.float32
    )
    out = jax.block_until_ready(
        learnable_texture_pack_forward(params, force_pallas=True)
    )
    ref = jax.nn.sigmoid(params)
    assert out.shape == (num_textures, num_channels, height, width)
    assert jnp.allclose(out, ref, atol=1e-5, rtol=1e-5)

    # 2) Medium pack (> 512 KiB) to exercise the multi-step tiled grid path.
    params_med = jax.random.normal(k1, (4, 4, 192, 192), dtype=jnp.float32)
    out_med = jax.block_until_ready(learnable_texture_pack_forward(params_med))
    assert jnp.allclose(out_med, jax.nn.sigmoid(params_med), atol=1e-5, rtol=1e-5)

    # 3) Non-128-divisible element count to exercise the padded fallback path.
    params_odd = jax.random.normal(k2, (2, 3, 17, 19), dtype=jnp.float32)
    out_odd = jax.block_until_ready(
        learnable_texture_pack_forward(params_odd, force_pallas=True)
    )
    assert jnp.allclose(out_odd, jax.nn.sigmoid(params_odd), atol=1e-5, rtol=1e-5)

    print("KERNEL_OK")
</pallas_src>

<mosaic_0001>
module attributes {stable_mosaic.version = 11 : i64} {
  func.func @_sigmoid_kernel(%arg0: i32, %arg1: memref<8x256xf32, #tpu.memory_space<vmem>>, %arg2: memref<8x256xf32, #tpu.memory_space<vmem>>) attributes {dimension_semantics = [#tpu.dimension_semantics<parallel>], iteration_bounds = array<i64: 1>, scalar_prefetch = 0 : i64, scratch_operands = 0 : i64, tpu.core_type = #tpu.core_type<tc>, window_params = [{transform_indices = @transform_0, window_bounds = array<i64: 8, 256>}, {transform_indices = @transform_1, window_bounds = array<i64: 8, 256>}]} {
    %c0 = arith.constant 0 : index
    %c0_0 = arith.constant 0 : index
    %0 = vector.load %arg1[%c0, %c0_0] : memref<8x256xf32, #tpu.memory_space<vmem>>, vector<8x256xf32>
    %cst = arith.constant 5.000000e-01 : f32
    %1 = vector.broadcast %cst : f32 to vector<8x256xf32>
    %2 = arith.mulf %0, %1 : vector<8x256xf32>
    %3 = math.tanh %2 : vector<8x256xf32>
    %cst_1 = arith.constant 1.000000e+00 : f32
    %4 = vector.broadcast %cst_1 : f32 to vector<8x256xf32>
    %5 = arith.addf %3, %4 : vector<8x256xf32>
    %cst_2 = arith.constant 5.000000e-01 : f32
    %6 = vector.broadcast %cst_2 : f32 to vector<8x256xf32>
    %7 = arith.mulf %6, %5 : vector<8x256xf32>
    %c0_3 = arith.constant 0 : index
    %c0_4 = arith.constant 0 : index
    %8 = vector.load %arg2[%c0_3, %c0_4] : memref<8x256xf32, #tpu.memory_space<vmem>>, vector<8x256xf32>
    tpu.vector_store %arg2[%c0_3, %c0_4], %7 {strides = array<i32>} : memref<8x256xf32, #tpu.memory_space<vmem>>, vector<8x256xf32>,
    return
  }
  func.func @transform_0(%arg0: i32) -> (i32, i32) {
    %c0_i32 = arith.constant 0 : i32
    %c0_i32_0 = arith.constant 0 : i32
    return %arg0, %c0_i32 : i32, i32
  }
  func.func @transform_1(%arg0: i32) -> (i32, i32) {
    %c0_i32 = arith.constant 0 : i32
    %c0_i32_0 = arith.constant 0 : i32
    return %arg0, %c0_i32 : i32, i32
  }
}

</mosaic_0001>

<bundles_post_ra>
// kernel: tpu_custom_call.1
= control target key start
LH: loop header
LB: loop body
LE: loop exit
PB: predicated region body
PF: predicated region fallthrough
CT: control target
= control target key end

     0   :  { %6 = vsyncpa [#allocation3], 0  ;;  %s128_s0 = inlined_call_operand.hbm [shape: f32[8,256], index: 0, kind: input, shape index: {}]   ;;  %s129_s1 = inlined_call_operand.hbm [shape: f32[8,256], index: 1, kind: output, shape index: {}]  }
   0x1   :  { %7 = vsyncpa [#allocation4], 0  ;;  %s13_s8 = sshll.u32 %s128_s0, 4  ;;  %s110_s9 = smov [#allocation2]   ;;  %s14_s8 = int_to_ptr.hbm [resolvable:$true] %s13_s8 }
   0x2   :  { %s15_s10 = sshll.u32 %s110_s9, 4  ;;  %s16_s10 = int_to_ptr.vmem [resolvable:$true] %s15_s10 }
   0x3   :  { %18 = dma.hbm_to_vmem [thread:$0]  %s14_s8, 256, %s16_s10, [#allocation3]  }
   0x4   :  { %106 = dma.done.wait [#allocation3], 256  }
   0x5   :  { %107 = vsyncadd [#allocation3], 4294967040  ;;  %v23_v0 = vld [vmem:[#allocation2] sm:$0xff]  ;;  %v24_v1 = vld [vmem:[#allocation2 + $0x8] sm:$0xff]  ;;  %s111_s11 = smov [#allocation5]   ;;  %s42_s14 = sshll.u32 %s129_s1, 4  ;;  %s43_s14 = int_to_ptr.hbm [resolvable:$true] %s42_s14 }
   0x6   :  { %v25_v2 = vmul.f32 0.5, %v23_v0  ;;  %v26_v3 = vmul.f32 0.5, %v24_v1  ;;  %s40_s12 = sshll.u32 %s111_s11, 4  ;;  %s41_s12 = int_to_ptr.vmem [resolvable:$true] %s40_s12 }
   0x8   :  { %54 = vtanh.f32 %v25_v2 }
   0x9   :  { %56 = vtanh.f32 %v26_v3 }
   0xe   :  { %v55_v4 = vpop.eup %54 }
   0xf   :  { %v57_v5 = vpop.eup %56  ;;  %v29_v6 = vadd.f32 1.0, %v55_v4 }
  0x10   :  { %v30_v7 = vadd.f32 1.0, %v57_v5 }
  0x11   :  { %v31_v8 = vmul.f32 0.5, %v29_v6 }
  0x12   :  { %v32_v9 = vmul.f32 0.5, %v30_v7 }
  0x13   :  { %33 = vst [vmem:[#allocation5] sm:$0xff] %v31_v8 }
  0x14   :  { %34 = vst [vmem:[#allocation5 + $0x8] sm:$0xff] %v32_v9 }
  0x15   :  { %45 = dma.vmem_to_hbm [thread:$0]  %s41_s12, 256, %s43_s14, [#allocation4]  }
  0x16   :  { %108 = dma.done.wait [#allocation4], 256  }
  0x17   :  { %109 = vsyncadd [#allocation4], 4294967040 }
  0x18   :  { %50 = vsyncpa [#allocation3], 1 }
  0x19   :  { %51 = vsyncpa [#allocation4], 1 }

</bundles_post_ra>
